<compile_context>
chip_gen: v6e
topology: v6e:2x2x1
jax: 0.10.0
libtpu: 0.0.40
codegen_flags: <defaults>
</compile_context>

<pallas_src>
import functools

import jax
import jax.numpy as jnp
from jax.experimental import pallas as pl
from jax.experimental.pallas import tpu as pltpu


def recurrent_dnnc_kernel(x_ref, wcat_ref, bcat_ref, bd_ref, w2_ref, b2_ref,
                          o_ref, h0_sc, *, seq_len, hidden_size):
    T = seq_len
    H = hidden_size
    BT = x_ref.shape[0]

    # ---- single MXU pass for everything upstream of the serial loop --------
    #   z[:, :H]  = x @ (w1 @ wd) + b1 @ wd          (recurrence pre-activation)
    #   z[:, H:]  = x @ (w1 @ w2) + b1 @ w2 + b2     (fc2(fc1(x)), rest batches)
    z = jnp.dot(x_ref[...], wcat_ref[...],
                preferred_element_type=jnp.float32) + bcat_ref[...]     # (BT, H+O)

    m0 = z[:T, :H]                                   # batch-0 recurrence head

    # ---- rest-batch output: fully independent of the recurrence ------------
    # Stored directly into its output sub-range (no concatenate, retires while
    # the serial chain runs).
    if BT > T:
        o_ref[T:, :] = jax.nn.sigmoid(z[T:, H:])

    bd_s = bd_ref[...]                               # bd * (1/H), pre-folded
    w2 = w2_ref[...]                                 # (H, O)
    b2 = b2_ref[...]                                 # (1, O)

    # ---- sequential recurrence, fully unrolled, state in vregs -------------
    # initial y = [0., 0.]  ->  mean(y) = 0  ->  carried sum = 0
    y_sum = jnp.zeros((1, 1), jnp.float32)           # (1,1) keepdims carry
    for t in range(T):                               # static unroll
        ht = jnp.tanh(m0[t:t + 1, :] + y_sum * bd_s)         # (1, H) VPU + EUP
        y_sum = jnp.sum(ht, axis=-1, keepdims=True)          # (1, 1) XLU reduce
        h0_sc[t:t + 1, :] = ht                       # scratch row write, off path

    # ---- batch-0 fc2 + sigmoid, stored to its output sub-range -------------
    logits0 = jnp.dot(h0_sc[...], w2, preferred_element_type=jnp.float32) + b2
    o_ref[:T, :] = jax.nn.sigmoid(logits0)


def recurrent_dnnc_forward(x, length, params):
    """x: (B, T, input_size) float32. Returns (B*T, output_size)."""
    del length  # unused in the reference forward()
    w1, b1, wd, bd, w2, b2 = params
    B, T, I = x.shape
    H = w1.shape[1]
    O = w2.shape[1]

    # Layout plumbing + weight fusion done in the wrapper (param prep).
    x2d = x.reshape(B * T, I)
    w1d = w1 @ wd                                            # (I, H)
    b1d = b1 @ wd                                            # (H,)
    w12 = w1 @ w2                                            # (I, O)
    b12 = b1 @ w2 + b2                                       # (O,)
    wcat = jnp.concatenate([w1d, w12], axis=1)               # (I, H+O)
    bcat = jnp.concatenate([b1d, b12], axis=0).reshape(1, H + O)
    bd_s = (bd * (1.0 / H)).reshape(1, H)                    # fold mean's 1/H

    kernel = functools.partial(recurrent_dnnc_kernel, seq_len=T, hidden_size=H)
    out = pl.pallas_call(
        kernel,
        out_shape=jax.ShapeDtypeStruct((B * T, O), jnp.float32),
        in_specs=[pl.BlockSpec(memory_space=pltpu.MemorySpace.VMEM)] * 6,
        out_specs=pl.BlockSpec(memory_space=pltpu.MemorySpace.VMEM),
        scratch_shapes=[pltpu.VMEM((T, H), jnp.float32)],
    )(x2d, wcat, bcat, bd_s, w2, b2.reshape(1, O))

    return out  # (B*T, O)


def reference_forward(x, params):
    """Pure-JAX reference matching the (placeholder-cell) semantics."""
    w1, b1, wd, bd, w2, b2 = params
    B, T, I = x.shape
    H = w1.shape[1]
    h = x @ w1 + b1                                          # (B, T, H)
    h1 = h
    y_mean = jnp.float32(0.0)                                # mean([0, 0]) == 0
    rows = []
    for t in range(T):
        ht = jnp.tanh(h[0, t] @ wd + y_mean * bd)            # (H,)
        y_mean = jnp.mean(ht)
        rows.append(ht)
    h1 = h1.at[0].set(jnp.stack(rows, axis=0))
    logits = h1 @ w2 + b2
    return jax.nn.sigmoid(logits).reshape(-1, w2.shape[1])


def init_params(key, input_size, hidden_size, output_size):
    k1, k2, k3, k4, k5, k6 = jax.random.split(key, 6)
    w1 = jax.random.normal(k1, (input_size, hidden_size), jnp.float32) * 0.1
    b1 = jax.random.normal(k2, (hidden_size,), jnp.float32) * 0.1
    wd = jax.random.normal(k3, (hidden_size, hidden_size), jnp.float32) * 0.1
    bd = jax.random.normal(k4, (hidden_size,), jnp.float32) * 0.1
    w2 = jax.random.normal(k5, (hidden_size, output_size), jnp.float32) * 0.1
    b2 = jax.random.normal(k6, (output_size,), jnp.float32) * 0.1
    return (w1, b1, wd, bd, w2, b2)


if __name__ == "__main__":
    # small shapes consistent with the module
    batch_size, seq_len, input_size, hidden_size, output_size = 2, 8, 16, 32, 2

    key = jax.random.PRNGKey(0)
    kx, kp = jax.random.split(key)
    x = jax.random.normal(kx, (batch_size, seq_len, input_size), jnp.float32)
    length = jnp.array([seq_len, seq_len], jnp.int32)   # unused, as in reference
    params = init_params(kp, input_size, hidden_size, output_size)

    out = recurrent_dnnc_forward(x, length, params)
    jax.block_until_ready(out)
    assert out.shape == (batch_size * seq_len, output_size)

    ref = reference_forward(x, params)
    assert bool(jnp.allclose(out, ref, rtol=1e-4, atol=1e-4)), "mismatch vs reference"
    print("KERNEL_OK")
</pallas_src>

<mosaic_0001>
module attributes {stable_mosaic.version = 11 : i64} {
  func.func @recurrent_dnnc_kernel(%arg0: memref<16x16xf32, #tpu.memory_space<vmem>>, %arg1: memref<16x34xf32, #tpu.memory_space<vmem>>, %arg2: memref<1x34xf32, #tpu.memory_space<vmem>>, %arg3: memref<1x32xf32, #tpu.memory_space<vmem>>, %arg4: memref<32x2xf32, #tpu.memory_space<vmem>>, %arg5: memref<1x2xf32, #tpu.memory_space<vmem>>, %arg6: memref<16x2xf32, #tpu.memory_space<vmem>>, %arg7: memref<8x32xf32, #tpu.memory_space<vmem>>) attributes {dimension_semantics = [], scalar_prefetch = 0 : i64, scratch_operands = 1 : i64, tpu.core_type = #tpu.core_type<tc>} {
    %c0 = arith.constant 0 : index
    %c0_0 = arith.constant 0 : index
    %0 = vector.load %arg0[%c0, %c0_0] : memref<16x16xf32, #tpu.memory_space<vmem>>, vector<16x16xf32>
    %c0_1 = arith.constant 0 : index
    %c0_2 = arith.constant 0 : index
    %1 = vector.load %arg1[%c0_1, %c0_2] : memref<16x34xf32, #tpu.memory_space<vmem>>, vector<16x34xf32>
    %cst = arith.constant dense<0.000000e+00> : vector<16x34xf32>
    %2 = tpu.matmul %0, %1, %cst {dimension_numbers = #tpu.dot_dimension_numbers<[1], [0], [0], [1], [0, 0, 1, 1], [], []>} : vector<16x16xf32>, vector<16x34xf32>, vector<16x34xf32> -> vector<16x34xf32>
    %c0_3 = arith.constant 0 : index
    %c0_4 = arith.constant 0 : index
    %3 = vector.load %arg2[%c0_3, %c0_4] : memref<1x34xf32, #tpu.memory_space<vmem>>, vector<1x34xf32>
    %4 = vector.broadcast %3 : vector<1x34xf32> to vector<16x34xf32>
    %5 = arith.addf %2, %4 : vector<16x34xf32>
    %6 = vector.extract_strided_slice %5 {offsets = [0, 0], sizes = [8, 32], strides = [1, 1]} : vector<16x34xf32> to vector<8x32xf32>
    %7 = vector.extract_strided_slice %5 {offsets = [8, 32], sizes = [8, 2], strides = [1, 1]} : vector<16x34xf32> to vector<8x2xf32>
    %8 = arith.negf %7 : vector<8x2xf32>
    %9 = math.exp %8 : vector<8x2xf32>
    %cst_5 = arith.constant 1.000000e+00 : f32
    %10 = vector.broadcast %cst_5 : f32 to vector<8x2xf32>
    %11 = arith.addf %10, %9 : vector<8x2xf32>
    %12 = arith.divf %10, %11 : vector<8x2xf32>
    %c8 = arith.constant 8 : index
    %c0_6 = arith.constant 0 : index
    %13 = vector.load %arg6[%c8, %c0_6] : memref<16x2xf32, #tpu.memory_space<vmem>>, vector<8x2xf32>
    tpu.vector_store %arg6[%c8, %c0_6], %12 {strides = array<i32>} : memref<16x2xf32, #tpu.memory_space<vmem>>, vector<8x2xf32>,
    %c0_7 = arith.constant 0 : index
    %c0_8 = arith.constant 0 : index
    %14 = vector.load %arg3[%c0_7, %c0_8] : memref<1x32xf32, #tpu.memory_space<vmem>>, vector<1x32xf32>
    %c0_9 = arith.constant 0 : index
    %c0_10 = arith.constant 0 : index
    %15 = vector.load %arg4[%c0_9, %c0_10] : memref<32x2xf32, #tpu.memory_space<vmem>>, vector<32x2xf32>
    %c0_11 = arith.constant 0 : index
    %c0_12 = arith.constant 0 : index
    %16 = vector.load %arg5[%c0_11, %c0_12] : memref<1x2xf32, #tpu.memory_space<vmem>>, vector<1x2xf32>
    %cst_13 = arith.constant 0.000000e+00 : f32
    %17 = vector.broadcast %cst_13 : f32 to vector<1x1xf32>
    %18 = vector.extract_strided_slice %6 {offsets = [0, 0], sizes = [1, 32], strides = [1, 1]} : vector<8x32xf32> to vector<1x32xf32>
    %19 = vector.broadcast %17 : vector<1x1xf32> to vector<1x32xf32>
    %20 = arith.mulf %19, %14 : vector<1x32xf32>
    %21 = arith.addf %18, %20 : vector<1x32xf32>
    %22 = math.tanh %21 : vector<1x32xf32>
    %cst_14 = arith.constant dense<0.000000e+00> : vector<1xf32>
    %23 = vector.multi_reduction <add>, %22, %cst_14 [1] : vector<1x32xf32> to vector<1xf32>
    %24 = vector.shape_cast %23 : vector<1xf32> to vector<1x1xf32>
    %c0_15 = arith.constant 0 : index
    %c0_16 = arith.constant 0 : index
    %25 = vector.load %arg7[%c0_15, %c0_16] : memref<8x32xf32, #tpu.memory_space<vmem>>, vector<1x32xf32>
    tpu.vector_store %arg7[%c0_15, %c0_16], %22 {strides = array<i32>} : memref<8x32xf32, #tpu.memory_space<vmem>>, vector<1x32xf32>,
    %26 = vector.extract_strided_slice %6 {offsets = [1, 0], sizes = [1, 32], strides = [1, 1]} : vector<8x32xf32> to vector<1x32xf32>
    %27 = vector.broadcast %24 : vector<1x1xf32> to vector<1x32xf32>
    %28 = arith.mulf %27, %14 : vector<1x32xf32>
    %29 = arith.addf %26, %28 : vector<1x32xf32>
    %30 = math.tanh %29 : vector<1x32xf32>
    %cst_17 = arith.constant dense<0.000000e+00> : vector<1xf32>
    %31 = vector.multi_reduction <add>, %30, %cst_17 [1] : vector<1x32xf32> to vector<1xf32>
    %32 = vector.shape_cast %31 : vector<1xf32> to vector<1x1xf32>
    %c1 = arith.constant 1 : index
    %c0_18 = arith.constant 0 : index
    %33 = vector.load %arg7[%c1, %c0_18] : memref<8x32xf32, #tpu.memory_space<vmem>>, vector<1x32xf32>
    tpu.vector_store %arg7[%c1, %c0_18], %30 {strides = array<i32>} : memref<8x32xf32, #tpu.memory_space<vmem>>, vector<1x32xf32>,
    %34 = vector.extract_strided_slice %6 {offsets = [2, 0], sizes = [1, 32], strides = [1, 1]} : vector<8x32xf32> to vector<1x32xf32>
    %35 = vector.broadcast %32 : vector<1x1xf32> to vector<1x32xf32>
    %36 = arith.mulf %35, %14 : vector<1x32xf32>
    %37 = arith.addf %34, %36 : vector<1x32xf32>
    %38 = math.tanh %37 : vector<1x32xf32>
    %cst_19 = arith.constant dense<0.000000e+00> : vector<1xf32>
    %39 = vector.multi_reduction <add>, %38, %cst_19 [1] : vector<1x32xf32> to vector<1xf32>
    %40 = vector.shape_cast %39 : vector<1xf32> to vector<1x1xf32>
    %c2 = arith.constant 2 : index
    %c0_20 = arith.constant 0 : index
    %41 = vector.load %arg7[%c2, %c0_20] : memref<8x32xf32, #tpu.memory_space<vmem>>, vector<1x32xf32>
    tpu.vector_store %arg7[%c2, %c0_20], %38 {strides = array<i32>} : memref<8x32xf32, #tpu.memory_space<vmem>>, vector<1x32xf32>,
    %42 = vector.extract_strided_slice %6 {offsets = [3, 0], sizes = [1, 32], strides = [1, 1]} : vector<8x32xf32> to vector<1x32xf32>
    %43 = vector.broadcast %40 : vector<1x1xf32> to vector<1x32xf32>
    %44 = arith.mulf %43, %14 : vector<1x32xf32>
    %45 = arith.addf %42, %44 : vector<1x32xf32>
    %46 = math.tanh %45 : vector<1x32xf32>
    %cst_21 = arith.constant dense<0.000000e+00> : vector<1xf32>
    %47 = vector.multi_reduction <add>, %46, %cst_21 [1] : vector<1x32xf32> to vector<1xf32>
    %48 = vector.shape_cast %47 : vector<1xf32> to vector<1x1xf32>
    %c3 = arith.constant 3 : index
    %c0_22 = arith.constant 0 : index
    %49 = vector.load %arg7[%c3, %c0_22] : memref<8x32xf32, #tpu.memory_space<vmem>>, vector<1x32xf32>
    tpu.vector_store %arg7[%c3, %c0_22], %46 {strides = array<i32>} : memref<8x32xf32, #tpu.memory_space<vmem>>, vector<1x32xf32>,
    %50 = vector.extract_strided_slice %6 {offsets = [4, 0], sizes = [1, 32], strides = [1, 1]} : vector<8x32xf32> to vector<1x32xf32>
    %51 = vector.broadcast %48 : vector<1x1xf32> to vector<1x32xf32>
    %52 = arith.mulf %51, %14 : vector<1x32xf32>
    %53 = arith.addf %50, %52 : vector<1x32xf32>
    %54 = math.tanh %53 : vector<1x32xf32>
    %cst_23 = arith.constant dense<0.000000e+00> : vector<1xf32>
    %55 = vector.multi_reduction <add>, %54, %cst_23 [1] : vector<1x32xf32> to vector<1xf32>
    %56 = vector.shape_cast %55 : vector<1xf32> to vector<1x1xf32>
    %c4 = arith.constant 4 : index
    %c0_24 = arith.constant 0 : index
    %57 = vector.load %arg7[%c4, %c0_24] : memref<8x32xf32, #tpu.memory_space<vmem>>, vector<1x32xf32>
    tpu.vector_store %arg7[%c4, %c0_24], %54 {strides = array<i32>} : memref<8x32xf32, #tpu.memory_space<vmem>>, vector<1x32xf32>,
    %58 = vector.extract_strided_slice %6 {offsets = [5, 0], sizes = [1, 32], strides = [1, 1]} : vector<8x32xf32> to vector<1x32xf32>
    %59 = vector.broadcast %56 : vector<1x1xf32> to vector<1x32xf32>
    %60 = arith.mulf %59, %14 : vector<1x32xf32>
    %61 = arith.addf %58, %60 : vector<1x32xf32>
    %62 = math.tanh %61 : vector<1x32xf32>
    %cst_25 = arith.constant dense<0.000000e+00> : vector<1xf32>
    %63 = vector.multi_reduction <add>, %62, %cst_25 [1] : vector<1x32xf32> to vector<1xf32>
    %64 = vector.shape_cast %63 : vector<1xf32> to vector<1x1xf32>
    %c5 = arith.constant 5 : index
    %c0_26 = arith.constant 0 : index
    %65 = vector.load %arg7[%c5, %c0_26] : memref<8x32xf32, #tpu.memory_space<vmem>>, vector<1x32xf32>
    tpu.vector_store %arg7[%c5, %c0_26], %62 {strides = array<i32>} : memref<8x32xf32, #tpu.memory_space<vmem>>, vector<1x32xf32>,
    %66 = vector.extract_strided_slice %6 {offsets = [6, 0], sizes = [1, 32], strides = [1, 1]} : vector<8x32xf32> to vector<1x32xf32>
    %67 = vector.broadcast %64 : vector<1x1xf32> to vector<1x32xf32>
    %68 = arith.mulf %67, %14 : vector<1x32xf32>
    %69 = arith.addf %66, %68 : vector<1x32xf32>
    %70 = math.tanh %69 : vector<1x32xf32>
    %cst_27 = arith.constant dense<0.000000e+00> : vector<1xf32>
    %71 = vector.multi_reduction <add>, %70, %cst_27 [1] : vector<1x32xf32> to vector<1xf32>
    %72 = vector.shape_cast %71 : vector<1xf32> to vector<1x1xf32>
    %c6 = arith.constant 6 : index
    %c0_28 = arith.constant 0 : index
    %73 = vector.load %arg7[%c6, %c0_28] : memref<8x32xf32, #tpu.memory_space<vmem>>, vector<1x32xf32>
    tpu.vector_store %arg7[%c6, %c0_28], %70 {strides = array<i32>} : memref<8x32xf32, #tpu.memory_space<vmem>>, vector<1x32xf32>,
    %74 = vector.extract_strided_slice %6 {offsets = [7, 0], sizes = [1, 32], strides = [1, 1]} : vector<8x32xf32> to vector<1x32xf32>
    %75 = vector.broadcast %72 : vector<1x1xf32> to vector<1x32xf32>
    %76 = arith.mulf %75, %14 : vector<1x32xf32>
    %77 = arith.addf %74, %76 : vector<1x32xf32>
    %78 = math.tanh %77 : vector<1x32xf32>
    %c7 = arith.constant 7 : index
    %c0_29 = arith.constant 0 : index
    %79 = vector.load %arg7[%c7, %c0_29] : memref<8x32xf32, #tpu.memory_space<vmem>>, vector<1x32xf32>
    tpu.vector_store %arg7[%c7, %c0_29], %78 {strides = array<i32>} : memref<8x32xf32, #tpu.memory_space<vmem>>, vector<1x32xf32>,
    %c0_30 = arith.constant 0 : index
    %c0_31 = arith.constant 0 : index
    %80 = vector.load %arg7[%c0_30, %c0_31] : memref<8x32xf32, #tpu.memory_space<vmem>>, vector<8x32xf32>
    %cst_32 = arith.constant dense<0.000000e+00> : vector<8x2xf32>
    %81 = tpu.matmul %80, %15, %cst_32 {dimension_numbers = #tpu.dot_dimension_numbers<[1], [0], [0], [1], [0, 0, 1, 1], [], []>} : vector<8x32xf32>, vector<32x2xf32>, vector<8x2xf32> -> vector<8x2xf32>
    %82 = vector.broadcast %16 : vector<1x2xf32> to vector<8x2xf32>
    %83 = arith.addf %81, %82 : vector<8x2xf32>
    %84 = arith.negf %83 : vector<8x2xf32>
    %85 = math.exp %84 : vector<8x2xf32>
    %cst_33 = arith.constant 1.000000e+00 : f32
    %86 = vector.broadcast %cst_33 : f32 to vector<8x2xf32>
    %87 = arith.addf %86, %85 : vector<8x2xf32>
    %88 = arith.divf %86, %87 : vector<8x2xf32>
    %c0_34 = arith.constant 0 : index
    %c0_35 = arith.constant 0 : index
    %89 = vector.load %arg6[%c0_34, %c0_35] : memref<16x2xf32, #tpu.memory_space<vmem>>, vector<8x2xf32>
    tpu.vector_store %arg6[%c0_34, %c0_35], %88 {strides = array<i32>} : memref<16x2xf32, #tpu.memory_space<vmem>>, vector<8x2xf32>,
    return
  }
}

</mosaic_0001>

<bundles_post_ra>
// kernel: tpu_custom_call.1
= control target key start
LH: loop header
LB: loop body
LE: loop exit
PB: predicated region body
PF: predicated region fallthrough
CT: control target
= control target key end

     0   :  { %vm34_vm0 = vcmask 130048   ;;  %vm137_vm1 = vcmask 253952   ;;  %vm148_vm2 = vcmask 254977   ;;  %v154_v20 = vlaneseq  ;;  %s472_s1 = inlined_call_operand.vmem [shape: f32[16,34], index: 1, kind: input, shape index: {}]   ;;  %s473_s0 = inlined_call_operand.vmem [shape: f32[16,16], index: 0, kind: input, shape index: {}]   ;;  %s474_s2 = inlined_call_operand.vmem [shape: f32[1,34], index: 2, kind: input, shape index: {}]   ;;  %s475_s3 = inlined_call_operand.vmem [shape: f32[1,32], index: 3, kind: input, shape index: {}]   ;;  %s476_s6 = inlined_call_operand.vmem [shape: f32[16,2], index: 6, kind: output, shape index: {}]   ;;  %s477_s4 = inlined_call_operand.vmem [shape: f32[32,2], index: 4, kind: input, shape index: {}]   ;;  %s478_s5 = inlined_call_operand.vmem [shape: f32[1,2], index: 5, kind: input, shape index: {}]  }
   0x1   :  { %v26_v0 = vld [vmem:[%s472_s1 + $0x8] sm:$0xff]  ;;  %v25_v1 = vld [vmem:[%s472_s1] sm:$0xff]  ;;  %vm165_vm3 = vcmask 256002   ;;  %vm176_vm4 = vcmask 257027   ;;  %vm187_vm5 = vcmask 258052   ;;  %vm198_vm6 = vcmask 259077  }
   0x2   :  { %v23_v2 = vld [vmem:[%s473_s0] sm:$0xff]  ;;  %330 = vmatprep.subr.mxu0 %v26_v0  ;;  %v24_v3 = vld [vmem:[%s473_s0 + $0x8] sm:$0xff]  ;;  %v155_v21 = vshrl.u32 %v154_v20, 7  ;;  %s375_s0 = smov 96   ;;  %vm126_vm7 = vcmask 15360   ;;  %vm209_vm8 = vcmask 260102  }
   0x3   :  { %334 = vmatprep.mubr.msk.f32.mxu0 %vm34_vm0, %v23_v2  ;;  %331 = vmatpush3.msra.mxu0 %v26_v0  ;;  %v314_v4 = vld [vmem:[%s474_s2] ss:$0 sm:$0xff]  ;;  %v376_v59 = vmov 0.0   ;;  %v132_v60 = vld [vmem:[%s477_s4 + $0x18] sm:$0xff]  ;;  %v131_v61 = vld [vmem:[%s477_s4 + $0x10] sm:$0xff]  ;;  %vm377_vm9 = vmmov 0  }
   0x4   :  { %332 = vmatprep.subr.mxu0 %v25_v1  ;;  %v128_v5 = vld [vmem:[%s475_s3] sm:$0x1]  ;;  %v156_v22 = vsub.s32 0, %v155_v21  ;;  %337 = vmatprep.subr.mxu1 %v376_v59  ;;  %v130_v62 = vld [vmem:[%s477_s4 + $0x8] sm:$0xff]  ;;  %vm220_vm10 = vcmask 261127   ;;  %vm229_vm11 = vcmask 261120  }
   0x5   :  { %333 = vmatpush3.msra.mxu0 %v25_v1  ;;  %v134_v8 = vmul.f32 0.0, %v128_v5  ;;  %338 = vmatpush3.msra.mxu1 %v132_v60  ;;  %v129_v63 = vld [vmem:[%s477_s4] sm:$0xff] }
   0x6   :  { %335 = vmatmul.mubr.msk.f32.vlgmr.msra.gmra.mxu0 %vm34_vm0, %v24_v3  ;;  %v435_v23 = vrot.slane %v128_v5, %v156_v22  ;;  %345 = vmatprep.mubr.msk.f32.mxu1 %vm377_vm9, %v376_v59 }
   0x7   :  { %339 = vmatprep.subr.mxu1 %v376_v59 }
   0x8   :  { %340 = vmatpush3.msra.mxu1 %v131_v61 }
   0x9   :  { %341 = vmatprep.subr.mxu1 %v376_v59 }
   0xa   :  { %342 = vmatpush3.msra.mxu1 %v130_v62 }
   0xb   :  { %343 = vmatprep.subr.mxu1 %v376_v59 }
   0xc   :  { %344 = vmatpush3.msra.mxu1 %v129_v63 }
  0xc6   :  { %v336_v6 = vpop.f32.mrf.mxu0 }
  0xc7   :  { %v113_v7 = vadd.f32 %v336_v6, %v314_v4  ;;  %v318_v6 = vld [vmem:[%s478_s5] ss:$0 sm:$0xff] }
  0xc8   :  { %v107_v9 = vpop.f32.mrf.mxu0 }
  0xc9   :  { %v431_v10 = vadd.f32 %v314_v4, %v107_v9  ;;  %v317_v43 = vmul.f32 -1.442695, %v113_v7 }
  0xcb   :  { %v135_v11 = vadd.f32 %v134_v8, %v431_v10 }
  0xcd   :  { %351 = vtanh.f32 %v135_v11 }
  0xda   :  { %v352_v12 = vpop.eup %351 }
  0xdb   :  { %v138_v13 = vsel %vm137_vm1, %v352_v12, 0.0  ;;  %141 = vst.msk [vmem:[#allocation2] sm:$0x1] %vm137_vm1, %v352_v12 }
  0xdc   :  { %139 = vadd.xlane.f32.xlu0 %v138_v13 }
 0x165   :  { %v140_v14 = vpop.xlane.xlu0 %139 }
 0x166   :  { %v142_v15 = vmul.f32 %v140_v14, %v128_v5 }
 0x168   :  { %v144_v16 = vrot.slane %v142_v15, 7 }
 0x16a   :  { %v146_v17 = vadd.f32 %v144_v16, %v431_v10 }
 0x16c   :  { %353 = vtanh.f32 %v146_v17 }
 0x179   :  { %v354_v18 = vpop.eup %353 }
 0x17a   :  { %v149_v19 = vsel %vm148_vm2, %v354_v18, 0.0  ;;  %152 = vst.msk [vmem:[#allocation2] sm:$0x2] %vm148_vm2, %v354_v18 }
 0x17b   :  { %150 = vadd.xlane.f32.xlu0 %v149_v19 }
 0x204   :  { %v151_v24 = vpop.xlane.xlu0 %150 }
 0x205   :  { %v159_v25 = vmul.f32 %v435_v23, %v151_v24 }
 0x207   :  { %v161_v26 = vrot.slane %v159_v25, 7 }
 0x209   :  { %v163_v27 = vadd.f32 %v161_v26, %v431_v10 }
 0x20b   :  { %355 = vtanh.f32 %v163_v27 }
 0x218   :  { %v356_v28 = vpop.eup %355 }
 0x219   :  { %v166_v29 = vsel %vm165_vm3, %v356_v28, 0.0  ;;  %169 = vst.msk [vmem:[#allocation2] sm:$0x4] %vm165_vm3, %v356_v28 }
 0x21a   :  { %167 = vadd.xlane.f32.xlu1 %v166_v29 }
 0x2a3   :  { %v168_v30 = vpop.xlane.xlu1 %167 }
 0x2a4   :  { %v170_v31 = vmul.f32 %v168_v30, %v435_v23 }
 0x2a6   :  { %v172_v32 = vrot.slane %v170_v31, 7 }
 0x2a8   :  { %v174_v33 = vadd.f32 %v172_v32, %v431_v10 }
 0x2aa   :  { %357 = vtanh.f32 %v174_v33 }
 0x2b7   :  { %v358_v34 = vpop.eup %357 }
 0x2b8   :  { %v177_v35 = vsel %vm176_vm4, %v358_v34, 0.0  ;;  %180 = vst.msk [vmem:[#allocation2] sm:$0x8] %vm176_vm4, %v358_v34 }
 0x2b9   :  { %178 = vadd.xlane.f32.xlu1 %v177_v35 }
 0x342   :  { %v179_v36 = vpop.xlane.xlu1 %178 }
 0x343   :  { %v181_v37 = vmul.f32 %v179_v36, %v435_v23 }
 0x345   :  { %v183_v38 = vrot.slane %v181_v37, 7 }
 0x347   :  { %v185_v39 = vadd.f32 %v183_v38, %v431_v10 }
 0x349   :  { %359 = vtanh.f32 %v185_v39 }
 0x34a   :  { %361 = vpow2.f32 %v317_v43 }
 0x356   :  { %v360_v40 = vpop.eup %359 }
 0x357   :  { %v188_v41 = vsel %vm187_vm5, %v360_v40, 0.0  ;;  %191 = vst.msk [vmem:[#allocation2] sm:$0x10] %vm187_vm5, %v360_v40  ;;  %v362_v47 = vpop.eup %361 }
 0x358   :  { %189 = vadd.xlane.f32.xlu0 %v188_v41  ;;  %v119_v49 = vadd.f32 1.0, %v362_v47 }
 0x3e1   :  { %v190_v42 = vpop.xlane.xlu0 %189 }
 0x3e2   :  { %v192_v44 = vmul.f32 %v190_v42, %v435_v23 }
 0x3e4   :  { %v194_v45 = vrot.slane %v192_v44, 7 }
 0x3e6   :  { %v196_v46 = vadd.f32 %v194_v45, %v431_v10 }
 0x3e8   :  { %363 = vtanh.f32 %v196_v46 }
 0x3e9   :  { %365 = vrcp.f32 %v119_v49 }
 0x3f5   :  { %v364_v48 = vpop.eup %363 }
 0x3f6   :  { %v199_v50 = vsel %vm198_vm6, %v364_v48, 0.0  ;;  %202 = vst.msk [vmem:[#allocation2] sm:$0x20] %vm198_vm6, %v364_v48  ;;  %v366_v51 = vpop.eup %365 }
 0x3f7   :  { %200 = vadd.xlane.f32.xlu1 %v199_v50 }
 0x408   :  { %123 = vrot.lane.b32.xlu1 %v366_v51, %s375_s0 }
 0x480   :  { %v201_v52 = vpop.xlane.xlu1 %200 }
 0x481   :  { %v203_v53 = vmul.f32 %v201_v52, %v435_v23 }
 0x483   :  { %v205_v54 = vrot.slane %v203_v53, 7 }
 0x484   :  { %v124_v55 = vpop.permute.xlu1 %123 }
 0x485   :  { %v207_v56 = vadd.f32 %v205_v54, %v431_v10  ;;  %127 = vst.msk [vmem:[%s476_s6 + $0x8] sm:$0xff] %vm126_vm7, %v124_v55 }
 0x487   :  { %367 = vtanh.f32 %v207_v56 }
 0x494   :  { %v368_v57 = vpop.eup %367 }
 0x495   :  { %v210_v58 = vsel %vm209_vm8, %v368_v57, 0.0  ;;  %213 = vst.msk [vmem:[#allocation2] sm:$0x40] %vm209_vm8, %v368_v57 }
 0x496   :  { %211 = vadd.xlane.f32.xlu0 %v210_v58 }
 0x51f   :  { %v212_v0 = vpop.xlane.xlu0 %211 }
 0x520   :  { %v214_v1 = vmul.f32 %v212_v0, %v435_v23 }
 0x522   :  { %v216_v2 = vrot.slane %v214_v1, 7 }
 0x524   :  { %v218_v3 = vadd.f32 %v216_v2, %v431_v10 }
 0x526   :  { %369 = vtanh.f32 %v218_v3 }
 0x533   :  { %v370_v4 = vpop.eup %369 }
 0x534   :  { %221 = vst.msk [vmem:[#allocation2] sm:$0x80] %vm220_vm10, %v370_v4 }
 0x53b   :  { %v222_v5 = vld [vmem:[#allocation2] sm:$0xff] }
 0x53c   :  { %346 = vmatmul.mubr.msk.f32.vlgmr.msra.gmra.mxu1 %vm229_vm11, %v222_v5 }
 0x5fc   :  { %v299_v7 = vpop.f32.mrf.mxu1 }
 0x5fd   :  { %v300_v8 = vadd.f32 %v318_v6, %v299_v7 }
 0x5fe   :  { %v347_v9 = vpop.f32.mrf.mxu1 }
 0x5ff   :  { %v320_v11 = vmul.f32 -1.442695, %v300_v8 }
 0x601   :  { %371 = vpow2.f32 %v320_v11 }
 0x60e   :  { %v372_v12 = vpop.eup %371 }
 0x60f   :  { %v306_v13 = vadd.f32 1.0, %v372_v12 }
 0x611   :  { %373 = vrcp.f32 %v306_v13 }
 0x61e   :  { %v374_v10 = vpop.eup %373 }
 0x61f   :  { %309 = vst.msk [vmem:[%s476_s6] sm:$0xff] %vm126_vm7, %v374_v10 }

</bundles_post_ra>
